<compile_context>
chip_gen: v6e
topology: v6e:2x2x1
jax: 0.10.0
libtpu: 0.0.40
codegen_flags: <defaults>
</compile_context>

<pallas_src>
import functools
import math

import jax
import jax.numpy as jnp
from jax import lax
from jax.experimental import pallas as pl
from jax.experimental.pallas import tpu as pltpu

# Large finite sentinel instead of -inf (avoids -inf -> NaN on fully-masked rows).
_MASK_NEG = 1e30


def _flash_attn_kernel(q_ref, k_ref, v_ref, bias_ref, w_ref, b_ref, o_ref,
                       m_sc, l_sc, acc_sc, *, scale, exp_dtype):
    # q_ref:    (H, tq, Dq)   native dtype (cast to bf16 per-tile below)
    # k_ref:    (H, tk, Dq)   v_ref: (H, tk, Dv)
    # bias_ref: (1, tk)  f32  additive mask bias (0 = keep, -1e30 = masked)
    # w_ref:    (Dv, Do_pad) bf16   b_ref: (1, Do_pad) f32
    # o_ref:    (H, tq, Do_pad)
    # scratch:  m_sc / l_sc (H, tq, 1) f32,  acc_sc (H, tq, Dv) f32
    kv = pl.program_id(2)

    @pl.when(kv == 0)
    def _():
        m_sc[...] = jnp.full_like(m_sc, -_MASK_NEG)
        l_sc[...] = jnp.zeros_like(l_sc)
        acc_sc[...] = jnp.zeros_like(acc_sc)

    # Per-tile bf16 casts (VPU work hidden under the K/V DMA); scale folded into Q.
    q = (q_ref[...] * scale).astype(jnp.bfloat16)
    k = k_ref[...].astype(jnp.bfloat16)
    v = v_ref[...].astype(jnp.bfloat16)

    # Q @ K^T contracted over the shared hidden dim (no XLU transpose of K),
    # batched over heads on the MXU, f32 accumulate.
    s = lax.dot_general(q, k, (((2,), (2,)), ((0,), (0,))),
                        preferred_element_type=jnp.float32)        # (H, tq, tk)
    s = s + bias_ref[...][None]                                     # additive mask

    # Online-softmax update; stats stay f32, exp optionally on the bf16 EUP path.
    m_prev = m_sc[...]
    m_new = jnp.maximum(m_prev, jnp.max(s, axis=-1, keepdims=True))
    alpha = jnp.exp(m_prev - m_new)
    p = jnp.exp((s - m_new).astype(exp_dtype))                      # (H, tq, tk)
    l_sc[...] = alpha * l_sc[...] + jnp.sum(p, axis=-1, keepdims=True,
                                            dtype=jnp.float32)
    pv = lax.dot_general(p.astype(jnp.bfloat16), v,
                         (((2,), (1,)), ((0,), (0,))),
                         preferred_element_type=jnp.float32)        # (H, tq, Dv)
    acc_sc[...] = alpha * acc_sc[...] + pv
    m_sc[...] = m_new

    @pl.when(kv == pl.num_programs(2) - 1)
    def _():
        # Exact reciprocal: runs once per output block, off the hot loop.
        ctx = acc_sc[...] * pl.reciprocal(l_sc[...], approx=False)  # (H, tq, Dv)
        # Batched projection straight into the lane-dense (Do_pad) output block.
        proj = lax.dot_general(ctx.astype(jnp.bfloat16), w_ref[...],
                               (((2,), (0,)), ((), ())),
                               preferred_element_type=jnp.float32)  # (H, tq, Do_pad)
        o_ref[...] = (proj + b_ref[...][None]).astype(o_ref.dtype)


def _device_kind():
    try:
        return jax.devices()[0].device_kind.lower()
    except Exception:
        return ""


def _nbytes(shape, dtype):
    n = 1
    for d in shape:
        n *= int(d)
    return n * jnp.dtype(dtype).itemsize


def scaled_dot_product_attention(query, key, value, w, b, value_mask=None, *,
                                 kv_tile=None, sq_tile=256, out_dtype=None,
                                 vmem_limit_bytes=None):
    """query/key/value: [B, H, S, D]. Returns [B, H, Sq, output_dim].

    Accepts f32 or bf16 Q/K/V (cast to bf16 per-tile inside the kernel, so no
    wrapper-side HBM cast passes). Padded key positions MUST be zeroed in
    value_mask.
    """
    B, H, Sq, Dq = query.shape
    _, _, Sv, _ = key.shape
    Dv = value.shape[-1]
    Do = w.shape[-1]
    if out_dtype is None:
        out_dtype = query.dtype

    kind = _device_kind()
    if kv_tile is None:
        # Bigger streamed tiles amortize the per-step overhead on v6e (128 MiB
        # VMEM); smaller tiles keep v7x inside its 64 MiB.
        kv_tile = 1024 if "v6" in kind else (256 if "v7" in kind else 512)
    # bf16 exp uses the bf16 EUP path on v6e/v7x; keep f32 exp on v5 and older.
    bf16_eup = not any(t in kind for t in ("v2", "v3", "v4", "v5"))
    exp_dtype = jnp.bfloat16 if bf16_eup else jnp.float32

    if value_mask is None:
        value_mask = jnp.ones((B, Sv), dtype=jnp.int32)
    # Additive mask bias precomputed once (tiny array): kept -> 0, masked -> -1e30.
    bias3 = ((value_mask.astype(jnp.float32) - 1.0) * _MASK_NEG).reshape(B, 1, Sv)

    # Lane-dense output: pad the projection to a multiple of 128 lanes so the
    # epilogue store is an unmasked vst.
    Do_pad = ((Do + 127) // 128) * 128
    w_p = jnp.zeros((Dv, Do_pad), jnp.bfloat16).at[:, :Do].set(w.astype(jnp.bfloat16))
    b_p = jnp.zeros((1, Do_pad), jnp.float32).at[:, :Do].set(
        b.reshape(1, Do).astype(jnp.float32))

    tk = Sv if Sv <= kv_tile else kv_tile
    assert Sv % tk == 0, "value_seq must be a multiple of the kv tile"
    n_kv = Sv // tk
    tq = Sq if Sq <= sq_tile else sq_tile
    assert Sq % tq == 0, "query_seq must be a multiple of the Sq tile"
    n_sq = Sq // tq

    # VMEM budget from tile math (double-buffered blocks + persistent scratch),
    # with headroom; raises v5e's 16 MiB default, stays <= 60 MiB for v7x.
    est = 2 * (_nbytes((H, tq, Dq), query.dtype)
               + _nbytes((H, tk, Dq), key.dtype)
               + _nbytes((H, tk, Dv), value.dtype)
               + _nbytes((1, tk), jnp.float32)
               + _nbytes((Dv, Do_pad), jnp.bfloat16)
               + _nbytes((1, Do_pad), jnp.float32)
               + _nbytes((H, tq, Do_pad), out_dtype))
    est += 2 * _nbytes((H, tq, 128), jnp.float32) + _nbytes((H, tq, Dv), jnp.float32)
    if vmem_limit_bytes is None:
        vmem_limit_bytes = int(min(60 << 20, max(32 << 20, 2 * est + (8 << 20))))

    kernel = functools.partial(_flash_attn_kernel,
                               scale=1.0 / math.sqrt(Dq),
                               exp_dtype=exp_dtype)

    out = pl.pallas_call(
        kernel,
        out_shape=jax.ShapeDtypeStruct((B, H, Sq, Do_pad), out_dtype),
        grid_spec=pltpu.PrefetchScalarGridSpec(
            num_scalar_prefetch=0,
            grid=(B, n_sq, n_kv),                     # kv reduction axis last
            in_specs=[
                pl.BlockSpec((pl.Squeezed(), H, tq, Dq),
                             lambda b_, s_, k_: (b_, 0, s_, 0)),
                pl.BlockSpec((pl.Squeezed(), H, tk, Dq),
                             lambda b_, s_, k_: (b_, 0, k_, 0)),
                pl.BlockSpec((pl.Squeezed(), H, tk, Dv),
                             lambda b_, s_, k_: (b_, 0, k_, 0)),
                pl.BlockSpec((pl.Squeezed(), 1, tk),
                             lambda b_, s_, k_: (b_, 0, k_)),
                pl.BlockSpec((Dv, Do_pad), lambda b_, s_, k_: (0, 0)),
                pl.BlockSpec((1, Do_pad), lambda b_, s_, k_: (0, 0)),
            ],
            out_specs=pl.BlockSpec((pl.Squeezed(), H, tq, Do_pad),
                                   lambda b_, s_, k_: (b_, 0, s_, 0)),
            scratch_shapes=[
                pltpu.VMEM((H, tq, 1), jnp.float32),   # running max
                pltpu.VMEM((H, tq, 1), jnp.float32),   # running denom
                pltpu.VMEM((H, tq, Dv), jnp.float32),  # running numerator
            ],
        ),
        compiler_params=pltpu.CompilerParams(
            dimension_semantics=("parallel", "parallel", "arbitrary"),
            vmem_limit_bytes=vmem_limit_bytes),
    )(query, key, value, bias3, w_p, b_p)
    # Consumers chasing maximum perf should keep the 128-padded layout instead
    # of slicing here.
    return out[..., :Do]


def _reference(query, key, value, w, b, value_mask=None):
    scale = math.sqrt(query.shape[-1])
    scores = jnp.einsum("bhqd,bhkd->bhqk", query, key) / scale
    if value_mask is not None:
        m = value_mask.astype(bool).reshape(value_mask.shape[0], 1, 1, -1)
        scores = jnp.where(m, scores, -jnp.inf)
    weights = jax.nn.softmax(scores, axis=-1)
    attn = jnp.einsum("bhqk,bhkd->bhqd", weights, value)
    return attn @ w + b


if __name__ == "__main__":
    # Small shapes consistent with the wrapped module's forward contract.
    B, H = 2, 2
    Sq, Sv = 8, 8
    Dq, Dv, Do = 32, 32, 16   # query_hidden, value_hidden_size, output_dim

    key0 = jax.random.PRNGKey(0)
    kq, kk, kv, kw, kb, km = jax.random.split(key0, 6)

    query = jax.random.normal(kq, (B, H, Sq, Dq), dtype=jnp.float32)
    key_ = jax.random.normal(kk, (B, H, Sv, Dq), dtype=jnp.float32)
    value = jax.random.normal(kv, (B, H, Sv, Dv), dtype=jnp.float32)

    # Deterministic nn.Linear(value_hidden_size, output_dim) parameters.
    bound = 1.0 / math.sqrt(Dv)
    w = jax.random.uniform(kw, (Dv, Do), minval=-bound, maxval=bound, dtype=jnp.float32)
    b = jax.random.uniform(kb, (Do,), minval=-bound, maxval=bound, dtype=jnp.float32)

    # value_mask: keep at least the first position of every row.
    value_mask = (jax.random.uniform(km, (B, Sv)) > 0.3).astype(jnp.int32)
    value_mask = value_mask.at[:, 0].set(1)

    out = scaled_dot_product_attention(query, key_, value, w, b, value_mask)
    out = jax.block_until_ready(out)

    ref = _reference(query, key_, value, w, b, value_mask)
    assert out.shape == (B, H, Sq, Do)
    # bf16 MXU inputs (and bf16 exp on v6e/v7x) -> looser tolerance vs f32 ref.
    assert jnp.allclose(out, ref, atol=3e-2, rtol=3e-2), "mismatch vs reference"

    print("KERNEL_OK")
</pallas_src>

<mosaic_0001>
module attributes {stable_mosaic.version = 11 : i64} {
  func.func @_flash_attn_kernel(%arg0: i32, %arg1: i32, %arg2: i32, %arg3: memref<1x2x8x32xf32, #tpu.memory_space<vmem>>, %arg4: memref<1x2x8x32xf32, #tpu.memory_space<vmem>>, %arg5: memref<1x2x8x32xf32, #tpu.memory_space<vmem>>, %arg6: memref<1x1x8xf32, #tpu.memory_space<vmem>>, %arg7: memref<32x128xbf16, #tpu.memory_space<vmem>>, %arg8: memref<1x128xf32, #tpu.memory_space<vmem>>, %arg9: memref<1x2x8x128xf32, #tpu.memory_space<vmem>>, %arg10: memref<2x8x1xf32, #tpu.memory_space<vmem>>, %arg11: memref<2x8x1xf32, #tpu.memory_space<vmem>>, %arg12: memref<2x8x32xf32, #tpu.memory_space<vmem>>) attributes {dimension_semantics = [#tpu.dimension_semantics<parallel>, #tpu.dimension_semantics<parallel>, #tpu.dimension_semantics<arbitrary>], iteration_bounds = array<i64: 2, 1, 1>, scalar_prefetch = 0 : i64, scratch_operands = 3 : i64, tpu.core_type = #tpu.core_type<tc>, window_params = [{transform_indices = @transform_0, window_bounds = array<i64: 1, 2, 8, 32>}, {transform_indices = @transform_1, window_bounds = array<i64: 1, 2, 8, 32>}, {transform_indices = @transform_2, window_bounds = array<i64: 1, 2, 8, 32>}, {transform_indices = @transform_3, window_bounds = array<i64: 1, 1, 8>}, {pipeline_mode = #tpu.pipeline_mode<synchronous>, transform_indices = @transform_4, window_bounds = array<i64: 32, 128>}, {pipeline_mode = #tpu.pipeline_mode<synchronous>, transform_indices = @transform_5, window_bounds = array<i64: 1, 128>}, {transform_indices = @transform_6, window_bounds = array<i64: 1, 2, 8, 128>}]} {
    %c0_i32 = arith.constant 0 : i32
    %0 = arith.cmpi eq, %arg2, %c0_i32 : i32
    %1 = arith.extui %0 : i1 to i32
    %c0_i32_0 = arith.constant 0 : i32
    %2 = arith.cmpi ne, %1, %c0_i32_0 : i32
    scf.if %2 {
      %cst_39 = arith.constant -1.000000e+30 : f32
      %47 = vector.broadcast %cst_39 : f32 to vector<2x8x1xf32>
      %c0_40 = arith.constant 0 : index
      %c0_41 = arith.constant 0 : index
      %c0_42 = arith.constant 0 : index
      %48 = vector.load %arg10[%c0_40, %c0_41, %c0_42] : memref<2x8x1xf32, #tpu.memory_space<vmem>>, vector<2x8x1xf32>
      tpu.vector_store %arg10[%c0_40, %c0_41, %c0_42], %47 {strides = array<i32>} : memref<2x8x1xf32, #tpu.memory_space<vmem>>, vector<2x8x1xf32>,
      %cst_43 = arith.constant 0.000000e+00 : f32
      %49 = vector.broadcast %cst_43 : f32 to vector<2x8x1xf32>
      %c0_44 = arith.constant 0 : index
      %c0_45 = arith.constant 0 : index
      %c0_46 = arith.constant 0 : index
      %50 = vector.load %arg11[%c0_44, %c0_45, %c0_46] : memref<2x8x1xf32, #tpu.memory_space<vmem>>, vector<2x8x1xf32>
      tpu.vector_store %arg11[%c0_44, %c0_45, %c0_46], %49 {strides = array<i32>} : memref<2x8x1xf32, #tpu.memory_space<vmem>>, vector<2x8x1xf32>,
      %cst_47 = arith.constant 0.000000e+00 : f32
      %51 = vector.broadcast %cst_47 : f32 to vector<2x8x32xf32>
      %c0_48 = arith.constant 0 : index
      %c0_49 = arith.constant 0 : index
      %c0_50 = arith.constant 0 : index
      %52 = vector.load %arg12[%c0_48, %c0_49, %c0_50] : memref<2x8x32xf32, #tpu.memory_space<vmem>>, vector<2x8x32xf32>
      tpu.vector_store %arg12[%c0_48, %c0_49, %c0_50], %51 {strides = array<i32>} : memref<2x8x32xf32, #tpu.memory_space<vmem>>, vector<2x8x32xf32>,
    } else {
    }
    %c0 = arith.constant 0 : index
    %c0_1 = arith.constant 0 : index
    %c0_2 = arith.constant 0 : index
    %c0_3 = arith.constant 0 : index
    %3 = vector.load %arg3[%c0, %c0_1, %c0_2, %c0_3] : memref<1x2x8x32xf32, #tpu.memory_space<vmem>>, vector<1x2x8x32xf32>
    %4 = vector.shape_cast %3 : vector<1x2x8x32xf32> to vector<2x8x32xf32>
    %cst = arith.constant 0.176776692 : f32
    %5 = vector.broadcast %cst : f32 to vector<2x8x32xf32>
    %6 = arith.mulf %4, %5 : vector<2x8x32xf32>
    %7 = arith.truncf %6 : vector<2x8x32xf32> to vector<2x8x32xbf16>
    %c0_4 = arith.constant 0 : index
    %c0_5 = arith.constant 0 : index
    %c0_6 = arith.constant 0 : index
    %c0_7 = arith.constant 0 : index
    %8 = vector.load %arg4[%c0_4, %c0_5, %c0_6, %c0_7] : memref<1x2x8x32xf32, #tpu.memory_space<vmem>>, vector<1x2x8x32xf32>
    %9 = vector.shape_cast %8 : vector<1x2x8x32xf32> to vector<2x8x32xf32>
    %10 = arith.truncf %9 : vector<2x8x32xf32> to vector<2x8x32xbf16>
    %c0_8 = arith.constant 0 : index
    %c0_9 = arith.constant 0 : index
    %c0_10 = arith.constant 0 : index
    %c0_11 = arith.constant 0 : index
    %11 = vector.load %arg5[%c0_8, %c0_9, %c0_10, %c0_11] : memref<1x2x8x32xf32, #tpu.memory_space<vmem>>, vector<1x2x8x32xf32>
    %12 = vector.shape_cast %11 : vector<1x2x8x32xf32> to vector<2x8x32xf32>
    %13 = arith.truncf %12 : vector<2x8x32xf32> to vector<2x8x32xbf16>
    %cst_12 = arith.constant dense<0.000000e+00> : vector<2x8x8xf32>
    %14 = tpu.matmul %7, %10, %cst_12 {dimension_numbers = #tpu.dot_dimension_numbers<[2], [2], [1], [1], [0, 0, 0, 1, 1, 1], [0], [0]>} : vector<2x8x32xbf16>, vector<2x8x32xbf16>, vector<2x8x8xf32> -> vector<2x8x8xf32>
    %c0_13 = arith.constant 0 : index
    %c0_14 = arith.constant 0 : index
    %c0_15 = arith.constant 0 : index
    %15 = vector.load %arg6[%c0_13, %c0_14, %c0_15] : memref<1x1x8xf32, #tpu.memory_space<vmem>>, vector<1x1x8xf32>
    %16 = vector.shape_cast %15 : vector<1x1x8xf32> to vector<1x8xf32>
    %17 = vector.shape_cast %16 : vector<1x8xf32> to vector<1x1x8xf32>
    %18 = vector.broadcast %17 : vector<1x1x8xf32> to vector<2x8x8xf32>
    %19 = arith.addf %14, %18 : vector<2x8x8xf32>
    %c0_16 = arith.constant 0 : index
    %c0_17 = arith.constant 0 : index
    %c0_18 = arith.constant 0 : index
    %20 = vector.load %arg10[%c0_16, %c0_17, %c0_18] : memref<2x8x1xf32, #tpu.memory_space<vmem>>, vector<2x8x1xf32>
    %cst_19 = arith.constant dense<0xFF800000> : vector<2x8xf32>
    %21 = vector.multi_reduction <maximumf>, %19, %cst_19 [2] : vector<2x8x8xf32> to vector<2x8xf32>
    %22 = vector.shape_cast %21 : vector<2x8xf32> to vector<2x8x1xf32>
    %23 = arith.maximumf %20, %22 : vector<2x8x1xf32>
    %24 = arith.subf %20, %23 : vector<2x8x1xf32>
    %25 = math.exp %24 : vector<2x8x1xf32>
    %26 = vector.broadcast %23 : vector<2x8x1xf32> to vector<2x8x8xf32>
    %27 = arith.subf %19, %26 : vector<2x8x8xf32>
    %28 = arith.truncf %27 : vector<2x8x8xf32> to vector<2x8x8xbf16>
    %29 = math.exp %28 : vector<2x8x8xbf16>
    %c0_20 = arith.constant 0 : index
    %c0_21 = arith.constant 0 : index
    %c0_22 = arith.constant 0 : index
    %30 = vector.load %arg11[%c0_20, %c0_21, %c0_22] : memref<2x8x1xf32, #tpu.memory_space<vmem>>, vector<2x8x1xf32>
    %31 = arith.mulf %25, %30 : vector<2x8x1xf32>
    %32 = arith.extf %29 : vector<2x8x8xbf16> to vector<2x8x8xf32>
    %cst_23 = arith.constant dense<0.000000e+00> : vector<2x8xf32>
    %33 = vector.multi_reduction <add>, %32, %cst_23 [2] : vector<2x8x8xf32> to vector<2x8xf32>
    %34 = vector.shape_cast %33 : vector<2x8xf32> to vector<2x8x1xf32>
    %35 = arith.addf %31, %34 : vector<2x8x1xf32>
    %c0_24 = arith.constant 0 : index
    %c0_25 = arith.constant 0 : index
    %c0_26 = arith.constant 0 : index
    %36 = vector.load %arg11[%c0_24, %c0_25, %c0_26] : memref<2x8x1xf32, #tpu.memory_space<vmem>>, vector<2x8x1xf32>
    tpu.vector_store %arg11[%c0_24, %c0_25, %c0_26], %35 {strides = array<i32>} : memref<2x8x1xf32, #tpu.memory_space<vmem>>, vector<2x8x1xf32>,
    %cst_27 = arith.constant dense<0.000000e+00> : vector<2x8x32xf32>
    %37 = tpu.matmul %29, %13, %cst_27 {dimension_numbers = #tpu.dot_dimension_numbers<[2], [1], [1], [2], [0, 0, 0, 1, 1, 2], [0], [0]>} : vector<2x8x8xbf16>, vector<2x8x32xbf16>, vector<2x8x32xf32> -> vector<2x8x32xf32>
    %c0_28 = arith.constant 0 : index
    %c0_29 = arith.constant 0 : index
    %c0_30 = arith.constant 0 : index
    %38 = vector.load %arg12[%c0_28, %c0_29, %c0_30] : memref<2x8x32xf32, #tpu.memory_space<vmem>>, vector<2x8x32xf32>
    %39 = vector.broadcast %25 : vector<2x8x1xf32> to vector<2x8x32xf32>
    %40 = arith.mulf %39, %38 : vector<2x8x32xf32>
    %41 = arith.addf %40, %37 : vector<2x8x32xf32>
    %c0_31 = arith.constant 0 : index
    %c0_32 = arith.constant 0 : index
    %c0_33 = arith.constant 0 : index
    %42 = vector.load %arg12[%c0_31, %c0_32, %c0_33] : memref<2x8x32xf32, #tpu.memory_space<vmem>>, vector<2x8x32xf32>
    tpu.vector_store %arg12[%c0_31, %c0_32, %c0_33], %41 {strides = array<i32>} : memref<2x8x32xf32, #tpu.memory_space<vmem>>, vector<2x8x32xf32>,
    %c0_34 = arith.constant 0 : index
    %c0_35 = arith.constant 0 : index
    %c0_36 = arith.constant 0 : index
    %43 = vector.load %arg10[%c0_34, %c0_35, %c0_36] : memref<2x8x1xf32, #tpu.memory_space<vmem>>, vector<2x8x1xf32>
    tpu.vector_store %arg10[%c0_34, %c0_35, %c0_36], %23 {strides = array<i32>} : memref<2x8x1xf32, #tpu.memory_space<vmem>>, vector<2x8x1xf32>,
    %c0_i32_37 = arith.constant 0 : i32
    %44 = arith.cmpi eq, %arg2, %c0_i32_37 : i32
    %45 = arith.extui %44 : i1 to i32
    %c0_i32_38 = arith.constant 0 : i32
    %46 = arith.cmpi ne, %45, %c0_i32_38 : i32
    scf.if %46 {
      %c0_39 = arith.constant 0 : index
      %c0_40 = arith.constant 0 : index
      %c0_41 = arith.constant 0 : index
      %47 = vector.load %arg12[%c0_39, %c0_40, %c0_41] : memref<2x8x32xf32, #tpu.memory_space<vmem>>, vector<2x8x32xf32>
      %c0_42 = arith.constant 0 : index
      %c0_43 = arith.constant 0 : index
      %c0_44 = arith.constant 0 : index
      %48 = vector.load %arg11[%c0_42, %c0_43, %c0_44] : memref<2x8x1xf32, #tpu.memory_space<vmem>>, vector<2x8x1xf32>
      %49 = tpu.reciprocal %48 : vector<2x8x1xf32> -> vector<2x8x1xf32>
      %50 = vector.broadcast %49 : vector<2x8x1xf32> to vector<2x8x32xf32>
      %51 = arith.mulf %47, %50 : vector<2x8x32xf32>
      %52 = arith.truncf %51 : vector<2x8x32xf32> to vector<2x8x32xbf16>
      %c0_45 = arith.constant 0 : index
      %c0_46 = arith.constant 0 : index
      %53 = vector.load %arg7[%c0_45, %c0_46] : memref<32x128xbf16, #tpu.memory_space<vmem>>, vector<32x128xbf16>
      %cst_47 = arith.constant dense<0.000000e+00> : vector<2x8x128xf32>
      %54 = tpu.matmul %52, %53, %cst_47 {dimension_numbers = #tpu.dot_dimension_numbers<[2], [0], [0, 1], [1], [0, 0, 0, 1, 1, 1], [], []>} : vector<2x8x32xbf16>, vector<32x128xbf16>, vector<2x8x128xf32> -> vector<2x8x128xf32>
      %c0_48 = arith.constant 0 : index
      %c0_49 = arith.constant 0 : index
      %55 = vector.load %arg8[%c0_48, %c0_49] : memref<1x128xf32, #tpu.memory_space<vmem>>, vector<1x128xf32>
      %56 = vector.shape_cast %55 : vector<1x128xf32> to vector<1x1x128xf32>
      %57 = vector.broadcast %56 : vector<1x1x128xf32> to vector<2x8x128xf32>
      %58 = arith.addf %54, %57 : vector<2x8x128xf32>
      %c0_50 = arith.constant 0 : index
      %c0_51 = arith.constant 0 : index
      %c0_52 = arith.constant 0 : index
      %c0_53 = arith.constant 0 : index
      %59 = vector.load %arg9[%c0_50, %c0_51, %c0_52, %c0_53] : memref<1x2x8x128xf32, #tpu.memory_space<vmem>>, vector<1x2x8x128xf32>
      %60 = vector.shape_cast %59 : vector<1x2x8x128xf32> to vector<2x8x128xf32>
      %61 = vector.shape_cast %58 : vector<2x8x128xf32> to vector<1x2x8x128xf32>
      tpu.vector_store %arg9[%c0_50, %c0_51, %c0_52, %c0_53], %61 {strides = array<i32>} : memref<1x2x8x128xf32, #tpu.memory_space<vmem>>, vector<1x2x8x128xf32>,
    } else {
    }
    return
  }
  func.func @transform_0(%arg0: i32, %arg1: i32, %arg2: i32) -> (i32, i32, i32, i32) {
    %c0_i32 = arith.constant 0 : i32
    %c0_i32_0 = arith.constant 0 : i32
    %c0_i32_1 = arith.constant 0 : i32
    return %arg0, %c0_i32, %arg1, %c0_i32_0 : i32, i32, i32, i32
  }
  func.func @transform_1(%arg0: i32, %arg1: i32, %arg2: i32) -> (i32, i32, i32, i32) {
    %c0_i32 = arith.constant 0 : i32
    %c0_i32_0 = arith.constant 0 : i32
    %c0_i32_1 = arith.constant 0 : i32
    return %arg0, %c0_i32, %arg2, %c0_i32_0 : i32, i32, i32, i32
  }
  func.func @transform_2(%arg0: i32, %arg1: i32, %arg2: i32) -> (i32, i32, i32, i32) {
    %c0_i32 = arith.constant 0 : i32
    %c0_i32_0 = arith.constant 0 : i32
    %c0_i32_1 = arith.constant 0 : i32
    return %arg0, %c0_i32, %arg2, %c0_i32_0 : i32, i32, i32, i32
  }
  func.func @transform_3(%arg0: i32, %arg1: i32, %arg2: i32) -> (i32, i32, i32) {
    %c0_i32 = arith.constant 0 : i32
    %c0_i32_0 = arith.constant 0 : i32
    return %arg0, %c0_i32, %arg2 : i32, i32, i32
  }
  func.func @transform_4(%arg0: i32, %arg1: i32, %arg2: i32) -> (i32, i32) {
    %c0_i32 = arith.constant 0 : i32
    %c0_i32_0 = arith.constant 0 : i32
    %c0_i32_1 = arith.constant 0 : i32
    return %c0_i32, %c0_i32_0 : i32, i32
  }
  func.func @transform_5(%arg0: i32, %arg1: i32, %arg2: i32) -> (i32, i32) {
    %c0_i32 = arith.constant 0 : i32
    %c0_i32_0 = arith.constant 0 : i32
    %c0_i32_1 = arith.constant 0 : i32
    return %c0_i32, %c0_i32_0 : i32, i32
  }
  func.func @transform_6(%arg0: i32, %arg1: i32, %arg2: i32) -> (i32, i32, i32, i32) {
    %c0_i32 = arith.constant 0 : i32
    %c0_i32_0 = arith.constant 0 : i32
    %c0_i32_1 = arith.constant 0 : i32
    return %arg0, %c0_i32, %arg1, %c0_i32_0 : i32, i32, i32, i32
  }
}

</mosaic_0001>

<bundles_post_ra>
// kernel: tpu_custom_call.1
= control target key start
LH: loop header
LB: loop body
LE: loop exit
PB: predicated region body
PF: predicated region fallthrough
CT: control target
= control target key end

     0   :  { %s1721_s0 = inlined_call_operand.hbm [shape: f32[2,2,8,32], index: 0, kind: input, shape index: {}]   ;;  %s1722_s1 = inlined_call_operand.hbm [shape: f32[2,2,8,32], index: 1, kind: input, shape index: {}]   ;;  %s1723_s2 = inlined_call_operand.hbm [shape: f32[2,2,8,32], index: 2, kind: input, shape index: {}]   ;;  %s1724_s3 = inlined_call_operand.vmem [shape: f32[2,1,8], index: 3, kind: input, shape index: {}]   ;;  %s1725_s4 = inlined_call_operand.hbm [shape: bf16[32,128], index: 4, kind: input, shape index: {}]   ;;  %s1726_s5 = inlined_call_operand.vmem [shape: f32[1,128], index: 5, kind: input, shape index: {}]   ;;  %s1727_s6 = inlined_call_operand.hbm [shape: f32[2,2,8,128], index: 6, kind: output, shape index: {}]  }
   0x1   :  { %1740 = sst [smem:[#allocation23_spill]] %s1721_s0 }
   0x2   :  { %1741 = sst [smem:[#allocation24_spill]] %s1722_s1 }
   0x3   :  { %11 = vsyncpa [#allocation6], 0 }
   0x4   :  { %13 = vsyncpa [#allocation6 + $0x1], 0 }
   0x5   :  { %14 = vsyncpa [#allocation9], 0 }
   0x6   :  { %16 = vsyncpa [#allocation9 + $0x1], 0 }
   0x7   :  { %17 = vsyncpa [#allocation12], 0 }
   0x8   :  { %18 = vsyncpa [#allocation7], 0 }
   0x9   :  { %20 = vsyncpa [#allocation7 + $0x1], 0  ;;  %s1422_s21 = smov 0   ;;  %s1424_s22 = smov 0  }
   0xa   :  { %s1426_s23 = smov 0   ;;  %s1428_s24 = smov 0  }
   0xb   :  { %s1430_s25 = smov 0   ;;  %s1432_s26 = smov 0  }
   0xc LB: > { %1742 = sst [smem:[#allocation18_spill]] %s1366_s25  ;;  %s45_s27 = sadd.s32 1, %s1366_s25  ;;  %s1370_s26 = sphi %s1432_s26, %s26_s26   ;;  %s1366_s25 = sphi %s1430_s25, %s1768_s25   ;;  %s1362_s24 = sphi %s1428_s24, %s1767_s24   ;;  %s1358_s23 = sphi %s1426_s23, %s1771_s23   ;;  %s1354_s22 = sphi %s1424_s22, %s1770_s22   ;;  %s1350_s21 = sphi %s1422_s21, %s1769_s21  }
   0xd   : > { %1743 = sst [smem:[#allocation19_spill]] %s1370_s26  ;;  %s54_s28 = sadd.s32 1, %s1358_s23 }
   0xe   : > { %p47_p0 = scmp.ge.s32.totalorder %s45_s27, 2  ;;  %p61_p1 = scmp.ne.s32.totalorder %s1358_s23, %s1354_s22 }
   0xf   : > { %p62_p2 = scmp.eq.s32.totalorder %s1370_s26, 0  ;;  %p1094_p5 = scmp.lt.s32.totalorder %s1370_s26, 2 }
  0x10   : > { %s1773_s27 = smov (%p47_p0, %s45_s27), 0  ;;  %s1732_s30 = sand.u32 1, %s1358_s23  }
  0x11   : > { %1744 = sst [smem:[#allocation20_spill]] %s1773_s27  ;;  %p63_p4 = por %p62_p2, %p61_p1 }
  0x12   : > { %s49_s29 = ssub.s32 %s1366_s25, %s1773_s27  ;;  %s1469_s7 = sshll.u32 %s1732_s30, 4 }
  0x13   : > { %p52_p6 = scmp.eq.s32.totalorder %s49_s29, 0  ;;  %s1472_s8 = sshll.u32 %s1366_s25, 8 }
  0x14   : > { %p1474_p7 = pnand %p1094_p5, %p63_p4  ;;  %s283_s11 = sand.u32 1, %s1370_s26  }
  0x15   : > { %s1479_s10 = scalar_select %p52_p6, %s1358_s23, %s54_s28  }
  0x16   : > { %s1747_s1 = sld [smem:[#allocation24_spill]]  ;;  %s287_s15 = scalar_lea.vmem [#allocation8], %s1469_s7 }
  0x17   : > { %1746 = sst [smem:[#allocation21_spill]] %s1479_s10  ;;  %s295_s16 = sshll.u32 %s287_s15, 4  ;;  %s296_s16 = int_to_ptr.vmem [resolvable:$true] %s295_s16 }
  0x18   : > { %s1487_s17 = scalar_lea.sflag [#allocation9], %s283_s11  ;;  %p1734_p8 = pneg %p1474_p7 }
  0x19   : > { %s1185_s18 = scalar_lea.vmem %s296_s16, 256  ;;  %s1372_s19 = smov [#allocation8]  }
  0x1a   : > { %p1186_p9 = scmp.ne.s32.totalorder %s296_s16, %s1185_s18  ;;  %s1190_s20 = sshll.u32 %s1372_s19, 4  ;;  %s1191_s20 = int_to_ptr.vmem [resolvable:$false] %s1190_s20 }
  0x1b   : > { %s1192_s28 = scalar_lea.vmem %s1191_s20, 512  ;;  %p1193_p12 = scmp.lt.s32.totalorder %s296_s16, %s1191_s20 }
  0x1c   : > { %s294_s14 = scalar_lea.hbm %s1747_s1, %s1472_s8  ;;  %p1188_p10 = pnand %p1186_p9, %p1734_p8 }
  0x1d   : > { %p1194_p13 = scmp.lt.s32.totalorder %s1192_s28, %s1185_s18 }
  0x1e   : > { %p1189_p11 = pneg %p1188_p10 }
  0x1f   : > { %p1195_p0 = por %p1194_p13, %p1193_p12 }
  0x21   : > { %p1196_p2 = pnand %p1195_p0, %p1189_p11 }
  0x23   : > { %1199 = shalt.err (!%p1196_p2)
}
  0x24   : > { %s1728_s29 = smov 128   ;;  %s1730_s11 = smov 8  }
  0x25   : > { %1085 = dma.hbm_to_vmem [thread:$0]  (!%p1474_p7), %s294_s14, 256, %s296_s16, %s1487_s17, %s1728_s29, %s1728_s29, %s1730_s11  }
  0x26   : > { %s1501_s12 = sadd.s32 4294967295, %s1370_s26   ;;  %s981_s13 = sadd.s32 4294967294, %s1370_s26  }
  0x27   : > { %p67_p4 = scmp.ne.s32.totalorder %s1354_s22, %s1350_s21  ;;  %p1733_p5 = scmp.eq.s32.totalorder %s1501_s12, 0 }
  0x28   : > { %p219_p6 = scmp.eq.s32.totalorder %s1501_s12, 1  ;;  %p225_p9 = scmp.eq.s32.totalorder %s981_s13, 1 }
  0x29   : > { %p982_p10 = scmp.ge.s32.totalorder %s1370_s26, 1  ;;  %p1511_p11 = por %p1733_p5, %p67_p4 }
  0x2a   : > { %p1518_p12 = por %p219_p6, %p61_p1  ;;  %p1522_p13 = por %p225_p9, %p67_p4 }
  0x2b   : > { %p232_p0 = scmp.lt.s32.totalorder %s1370_s26, 3  ;;  %s1375_s19 = smov [#allocation11]  }
  0x2c   : > { %s1750_s16 = scalar_select %p1522_p13, 1, 0 }
  0x2d   : > { %p1527_p2 = pnand %p982_p10, %p232_p0  ;;  %s244_s20 = sshll.u32 %s1375_s19, 4  ;;  %s245_s20 = int_to_ptr.vmem [resolvable:$true] %s244_s20 }
  0x2e   : > { %1751 = sst [smem:[#allocation22_spill]] %s1750_s16  ;;  %s265_s30 = scalar_lea.vmem [#allocation5], %s1469_s7 }
  0x2f   : > { %p1075_p3 = pneg %p1527_p2  ;;  %s1754_s0 = sld [smem:[#allocation23_spill]] }
  0x30   : > { %s273_s1 = sshll.u32 %s265_s30, 4  ;;  %s1211_s19 = scalar_lea.vmem %s245_s20, 256  ;;  %s1544_s1 = int_to_ptr.vmem [resolvable:$true] %s273_s1 }
  0x31   : > { %p1535_p1 = pnand %p1075_p3, %p1733_p5  ;;  %p1212_p6 = scmp.ne.s32.totalorder %s245_s20, %s1211_s19 }
  0x32   : > { %p1219_p0 = scmp.lt.s32.totalorder %s245_s20, %s245_s20  ;;  %p1220_p3 = scmp.lt.s32.totalorder %s1211_s19, %s1211_s19 }
  0x33   : > { %p1202_p4 = pneg %p1535_p1 }
  0x34   : > { %p1221_p5 = por %p1220_p3, %p1219_p0 }
  0x35   : > { %p1214_p9 = pnand %p1212_p6, %p1202_p4 }
  0x37   : > { %p1215_p10 = pneg %p1214_p9 }
  0x39   : > { %p1222_p8 = pnand %p1221_p5, %p1215_p10 }
  0x3b   : > { %1225 = shalt.err (!%p1222_p8)
}
  0x3c   : > { %s1376_s27 = smov 64   ;;  %s1377_s30 = smov 4  }
  0x3d   : > { %1078 = dma.hbm_to_vmem [thread:$0]  (!%p1535_p1), %s1725_s4, 256, %s245_s20, [#allocation12], %s1376_s27, %s1376_s27, %s1377_s30  }
  0x3e   : > { %s1755_s11 = sand.u32 1, %s1358_s23   ;;  %s1239_s10 = scalar_lea.vmem %s1544_s1, 256 }
  0x3f   : > { %s262_s25 = scalar_lea.sflag [#allocation6], %s1755_s11  ;;  %p1240_p4 = scmp.ne.s32.totalorder %s1544_s1, %s1239_s10 }
  0x40   : > { %p1756_p5 = pneg %p1474_p7  ;;  %s1378_s19 = smov [#allocation5]  }
  0x41   : > { %s1244_s26 = sshll.u32 %s1378_s19, 4  ;;  %s1245_s26 = int_to_ptr.vmem [resolvable:$false] %s1244_s26 }
  0x42   : > { %p1242_p8 = pnand %p1240_p4, %p1756_p5  ;;  %s1246_s16 = scalar_lea.vmem %s1245_s26, 512 }
  0x43   : > { %p1247_p9 = scmp.lt.s32.totalorder %s1544_s1, %s1245_s26  ;;  %p1248_p10 = scmp.lt.s32.totalorder %s1246_s16, %s1239_s10 }
  0x44   : > { %p1243_p6 = pneg %p1242_p8 }
  0x45   : > { %p1249_p0 = por %p1248_p10, %p1247_p9 }
  0x47   : > { %p1250_p3 = pnand %p1249_p0, %p1243_p6 }
  0x49   : > { %1253 = shalt.err (!%p1250_p3)
}
  0x4a   : > { %s1757_s27 = smov 8   ;;  %s1758_s20 = smov 128  }
  0x4b   : > { %s1759_s30 = scalar_lea.hbm %s1754_s0, %s1472_s8  ;;  %s316_s16 = scalar_lea.hbm %s1723_s2, %s1472_s8 }
  0x4c   : > { %1082 = dma.hbm_to_vmem [thread:$0]  (!%p1474_p7), %s1759_s30, 256, %s1544_s1, %s262_s25, %s1758_s20, %s1758_s20, %s1757_s27  }
  0x4d   : > { %s309_s29 = scalar_lea.vmem [#allocation10], %s1469_s7  ;;  %p1760_p4 = pmov %p1756_p5 }
  0x4e   : > { %s317_s13 = sshll.u32 %s309_s29, 4  ;;  %s1379_s11 = smov [#allocation10]   ;;  %s318_s13 = int_to_ptr.vmem [resolvable:$true] %s317_s13 }
  0x4f   : > { %s1267_s19 = scalar_lea.vmem %s318_s13, 256  ;;  %s1272_s28 = sshll.u32 %s1379_s11, 4  ;;  %s1273_s28 = int_to_ptr.vmem [resolvable:$false] %s1272_s28 }
  0x50   : > { %p1268_p1 = scmp.ne.s32.totalorder %s318_s13, %s1267_s19  ;;  %s1274_s0 = scalar_lea.vmem %s1273_s28, 512 }
  0x51   : > { %p1275_p6 = scmp.lt.s32.totalorder %s318_s13, %s1273_s28  ;;  %p1276_p9 = scmp.lt.s32.totalorder %s1274_s0, %s1267_s19 }
  0x52   : > { %p1270_p5 = pnand %p1268_p1, %p1760_p4 }
  0x53   : > { %p1277_p10 = por %p1276_p9, %p1275_p6 }
  0x54   : > { %p1271_p8 = pneg %p1270_p5 }
  0x56   : > { %p1278_p0 = pnand %p1277_p10, %p1271_p8 }
  0x58   : > { %1281 = shalt.err (!%p1278_p0)
}
  0x59   : > { %1088 = dma.hbm_to_vmem [thread:$0]  (!%p1474_p7), %s316_s16, 256, %s318_s13, %s1487_s17, %s1758_s20, %s1758_s20, %s1757_s27  }
  0x5a   : > { %338 = sbr.rel (%p1527_p2) target bundleno = 1104 (0x450), region = 44  ;;  %s1589_s1 = sand.u32 (!%p1527_p2), 1, %s1354_s22  }
  0x5b   : > { %s1592_s0 = sshll.u32 (!%p1527_p2), %s1589_s1, 4  ;;  %s341_s25 = scalar_lea.sflag (!%p1527_p2), [#allocation6], %s1589_s1 }
  0x5c   : > { %s344_s7 = scalar_lea.vmem (!%p1527_p2), [#allocation5], %s1592_s0 }
  0x5f   : > { %1333 = dma.done.wait (%p1511_p11), %s341_s25, 256  }
  0x60   : > { %1335 = vsyncadd (%p1511_p11), %s341_s25, 4294967040  ;;  %s349_s8 = sand.u32 1, %s1501_s12   ;;  %s353_s17 = scalar_lea.vmem [#allocation8], %s1592_s0 }
  0x61   : > { %s350_s9 = scalar_lea.sflag [#allocation9], %s349_s8 }
  0x62   : > { %1337 = dma.done.wait (%p1511_p11), %s350_s9, 512  }
  0x63   : > { %1339 = vsyncadd (%p1511_p11), %s350_s9, 4294966784  ;;  %s362_s18 = scalar_lea.vmem [#allocation10], %s1592_s0  ;;  %p1761_p7 = scmp.eq.s32.totalorder %s1501_s12, 0 }
  0x65   : > { %1341 = dma.done.wait (%p1761_p7), [#allocation12], 256   ;;  %p1762_p2 = pmov %p1761_p7 }
  0x66   : > { %vm427_vm0 = vcmask 261120   ;;  %v1380_v0 = vmov 0.0   ;;  %vm1381_vm1 = vmmov 0   ;;  %v436_v1 = vld [vmem:[%s353_s17] sm:$0xff]  ;;  %v437_v2 = vld [vmem:[%s353_s17 + $0x8] sm:$0xff]  ;;  %vm422_vm2 = vcmask 7168  }
  0x67   : > { %1343 = vsyncadd (%p1762_p2), [#allocation12], 4294967040  ;;  %1031 = vmatprep.subr.bf16.mxu0 %v1380_v0  ;;  %1037 = vmatprep.subr.bf16.mxu1 %v1380_v0  ;;  %428 = vst.msk [vmem:[#allocation4] sm:$0xff] %vm427_vm0, %v1380_v0  ;;  %v430_v3 = vld [vmem:[%s344_s7] sm:$0xff]  ;;  %v438_v4 = vpack.c.bf16 %v436_v1, %v436_v1  ;;  %v439_v5 = vpack.c.bf16 %v437_v2, %v437_v2  ;;  %v431_v7 = vld [vmem:[%s344_s7 + $0x8] sm:$0xff]  ;;  %p411_p11 = scmp.lt.s32.totalorder %s1362_s24, 1 }
  0x68   : > { %429 = vst.msk [vmem:[#allocation4 + $0x8] sm:$0xff] %vm427_vm0, %v1380_v0  ;;  %1033 = vmatprep.mubr.msk.bf16.mxu0 %vm1381_vm1, %v1380_v0  ;;  %1039 = vmatprep.mubr.msk.bf16.mxu1 %vm1381_vm1, %v1380_v0  ;;  %v432_v6 = vmul.f32 0.17677669, %v430_v3  ;;  %v433_v8 = vmul.f32 0.17677669, %v431_v7  ;;  %vm546_vm3 = vcmask 64512  }
  0x69   : > { %v456_v9 = vsel %vm427_vm0, %v438_v4, 0  ;;  %v502_v10 = vsel %vm427_vm0, %v439_v5, 0  ;;  %v1382_v13 = vmov -1e+30   ;;  %425 = vst.msk [vmem:[#allocation3] sm:$0xff] %vm422_vm2, %v1380_v0  ;;  %426 = vst.msk [vmem:[#allocation3 + $0x8] sm:$0xff] %vm422_vm2, %v1380_v0 }
  0x6a   : > { %1032 = vmatpush3.bf16.xpose.msra.mxu0 %v456_v9  ;;  %1038 = vmatpush3.bf16.xpose.msra.mxu1 %v502_v10  ;;  %v434_v11 = vpack.c.bf16 %v432_v6, %v432_v6  ;;  %v435_v12 = vpack.c.bf16 %v433_v8, %v433_v8  ;;  %423 = vst.msk [vmem:[#allocation2] sm:$0xff] %vm422_vm2, %v1382_v13  ;;  %424 = vst.msk [vmem:[#allocation2 + $0x8] sm:$0xff] %vm422_vm2, %v1382_v13  ;;  %s412_s12 = scalar_select %p411_p11, %s1362_s24, 1  ;;  %v1383_v27 = vmov 0   ;;  %v440_v36 = vld [vmem:[%s362_s18] sm:$0xff]  ;;  %vm601_vm4 = vcmask 1043456  }
  0x6b   : > { %1043 = vmatprep.subr.bf16.mxu0 %v1380_v0  ;;  %1049 = vmatprep.subr.bf16.mxu1 %v1380_v0  ;;  %v442_v37 = vpack.c.bf16 %v440_v36, %v440_v36  ;;  %v441_v39 = vld [vmem:[%s362_s18 + $0x8] sm:$0xff]  ;;  %v1159_v9 = vld [vmem:[#allocation11] sm:$0xff]   ;;  %s410_s10 = scalar_lea.vmem [#allocation13], %s1592_s0  ;;  %s1019_s29 = sshll.u32 %s1362_s24, 8 }
  0x6c   : > { %s416_s20 = scalar_lea.vmem %s1724_s3, %s412_s12  ;;  %1156 = vset.pattern.permute.xlu1 %v1383_v27  ;;  %1157 = vset.pattern.permute.xlu0 %v1383_v27  ;;  %v443_v40 = vpack.c.bf16 %v441_v39, %v441_v39  ;;  %v1158_v7 = vld [vmem:[#allocation11 + $0x8] sm:$0xff]   ;;  %s823_s16 = sshll.u32 %s410_s10, 4  ;;  %s1668_s16 = int_to_ptr.vmem [resolvable:$true] %s823_s16 }
  0x6d   : > { %v1000_v14 = vld [vmem:[%s416_s20] ss:$0 sm:$0xff]  ;;  %v603_v38 = vsel %vm601_vm4, %v442_v37, 0  ;;  %s1673_s11 = scalar_lea.hbm %s1727_s6, %s1019_s29  ;;  %s809_s28 = scalar_lea.sflag [#allocation7], %s1589_s1 }
  0x6e   : > { %v649_v41 = vsel %vm601_vm4, %v443_v40, 0  ;;  %s1282_s0 = scalar_lea.vmem %s1668_s16, 256  ;;  %s1384_s24 = smov [#allocation13]  }
  0x6f   : > { %p1283_p3 = scmp.ne.s32.totalorder %s1668_s16, %s1282_s0  ;;  %s1286_s25 = sshll.u32 %s1384_s24, 4  ;;  %s1287_s25 = int_to_ptr.vmem [resolvable:$false] %s1286_s25 }
  0x70   : > { %v581_v60 = vld [vmem:[#allocation3] sm:$0xff]  ;;  %v582_v63 = vld [vmem:[#allocation3 + $0x8] sm:$0xff]  ;;  %s1288_s7 = scalar_lea.vmem %s1287_s25, 512  ;;  %p1289_p5 = scmp.lt.s32.totalorder %s1668_s16, %s1287_s25 }
  0x71   : > { %1034 = vmatmul.mubr.msk.bf16.vlgmr.msra.gmra.mxu0 %vm427_vm0, %v434_v11  ;;  %1040 = vmatmul.mubr.msk.bf16.vlgmr.msra.gmra.mxu1 %vm427_vm0, %v435_v12  ;;  %v544_v28 = vld [vmem:[#allocation2] sm:$0xff]  ;;  %v545_v31 = vld [vmem:[#allocation2 + $0x8] sm:$0xff]  ;;  %p1284_p1 = pnand %p1283_p3, %p1518_p12  ;;  %p1290_p8 = scmp.lt.s32.totalorder %s1288_s7, %s1282_s0 }
  0x72   : > { %1045 = vmatprep.mubr.msk.bf16.mxu0 %vm1381_vm1, %v1380_v0  ;;  %1051 = vmatprep.mubr.msk.bf16.mxu1 %vm1381_vm1, %v1380_v0  ;;  %v691_v11 = vld [vmem:[#allocation4] sm:$0xff] }
  0x73   : > { %1044 = vmatpush3.bf16.msra.mxu0 %v603_v38  ;;  %1050 = vmatpush3.bf16.msra.mxu1 %v649_v41  ;;  %p1285_p4 = pneg %p1284_p1  ;;  %p1291_p6 = por %p1290_p8, %p1289_p5 }
  0x74   : > { %1055 = vmatprep.subr.bf16.mxu0 %v1380_v0 }
  0x75   : > { %p1292_p9 = pnand %p1291_p6, %p1285_p4 }
 0x131   : > { %v492_v15 = vpop.f32.mrf.mxu0  ;;  %v538_v16 = vpop.f32.mrf.mxu1 }
 0x132   : > { %v493_v17 = vadd.f32 %v1000_v14, %v492_v15  ;;  %v539_v18 = vadd.f32 %v1000_v14, %v538_v16  ;;  %v692_v14 = vld [vmem:[#allocation4 + $0x8] sm:$0xff] }
 0x133   : > { %v1035_v19 = vpop.f32.mrf.mxu0  ;;  %v1041_v20 = vpop.f32.mrf.mxu1 }
 0x134   : > { %v547_v21 = vsel %vm546_vm3, %v493_v17, -inf  ;;  %v550_v24 = vsel %vm546_vm3, %v539_v18, -inf }
 0x135   : > { %v541_v22 = vpop.f32.mrf.mxu1  ;;  %548 = vmax.xlane.f32.xlu0 %v547_v21  ;;  %v495_v23 = vpop.f32.mrf.mxu0 }
 0x137   : > { %v1036_v25 = vpop.f32.mrf.mxu0  ;;  %v1042_v26 = vpop.f32.mrf.mxu1 }
 0x139   : > { %551 = vmax.xlane.f32.xlu0 %v550_v24 }
 0x1be   : > { %v549_v29 = vpop.xlane.xlu0 %548 }
 0x1bf   : > { %v553_v30 = vmax.f32 %v544_v28, %v549_v29 }
 0x1c1   : > { %v555_v32 = vsub.f32 %v544_v28, %v553_v30  ;;  %709 = vst.msk [vmem:[#allocation2] sm:$0xff] %vm422_vm2, %v553_v30  ;;  %563 = vperm.xlu1 %1156, %v553_v30  }
 0x1c2   : > { %v552_v33 = vpop.xlane.xlu0 %551 }
 0x1c3   : > { %v554_v34 = vmax.f32 %v545_v31, %v552_v33  ;;  %v557_v57 = vmul.f32 1.442695, %v555_v32  ;;  %v1005_v33 = vld [vmem:[%s1726_s5] ss:$0 sm:$0xff] }
 0x1c5   : > { %v556_v35 = vsub.f32 %v545_v31, %v554_v34  ;;  %710 = vst.msk [vmem:[#allocation2 + $0x8] sm:$0xff] %vm422_vm2, %v554_v34  ;;  %568 = vperm.xlu1 %1156, %v554_v34  }
 0x1c7   : > { %v559_v55 = vmul.f32 1.442695, %v556_v35 }
 0x23c   : > { %v564_v42 = vpop.permute.xlu1 %563 }
 0x23d   : > { %v571_v43 = vsub.f32 %v493_v17, %v564_v42 }
 0x23f   : > { %v573_v44 = vpack.c.bf16 %v571_v43, %v571_v43 }
 0x240   : > { %v569_v45 = vpop.permute.xlu1 %568 }
 0x241   : > { %v576_v46 = vmul.bf16 1069105081, %v573_v44  ;;  %v572_v47 = vsub.f32 %v539_v18, %v569_v45 }
 0x243   : > { %1160 = vpow.bf16 %v576_v46  ;;  %v574_v48 = vpack.c.bf16 %v572_v47, %v572_v47 }
 0x245   : > { %v579_v49 = vmul.bf16 1069105081, %v574_v48 }
 0x247   : > { %1162 = vpow.bf16 %v579_v49 }
 0x248   : > { %1164 = vpow2.f32 %v559_v55 }
 0x249   : > { %1166 = vpow2.f32 %v557_v57 }
 0x251   : > { %v1161_v50 = vpop.eup %1160 }
 0x252   : > { %1046 = vmatmul.mubr.msk.bf16.vlgmr.msra.gmra.mxu0 %vm546_vm3, %v1161_v50  ;;  %v585_v51 = vunpack.c.l.bf16 %v1161_v50 }
 0x253   : > { %1059 = vmatprep.mubr.msk.bf16.mxu0 %vm1381_vm1, %v1380_v0  ;;  %1056 = vmatpush3.bf16.msra.mxu0 %v1158_v7 }
 0x254   : > { %v587_v52 = vsel %vm546_vm3, %v585_v51, 0.0  ;;  %1057 = vmatprep.subr.bf16.mxu0 %v1380_v0 }
 0x255   : > { %v1163_v53 = vpop.eup %1162  ;;  %588 = vadd.xlane.f32.xlu0 %v587_v52 }
 0x256   : > { %1052 = vmatmul.mubr.msk.bf16.vlgmr.msra.gmra.mxu1 %vm546_vm3, %v1163_v53  ;;  %v586_v54 = vunpack.c.l.bf16 %v1163_v53  ;;  %v1165_v58 = vpop.eup %1164 }
 0x257   : > { %v1167_v59 = vpop.eup %1166  ;;  %v584_v2 = vmul.f32 %v1165_v58, %v582_v63  ;;  %1058 = vmatpush3.bf16.msra.mxu0 %v1159_v9 }
 0x258   : > { %v590_v56 = vsel %vm546_vm3, %v586_v54, 0.0  ;;  %v583_v61 = vmul.f32 %v1167_v59, %v581_v60 }
 0x259   : > { %591 = vadd.xlane.f32.xlu1 %v590_v56 }
 0x26a   : > { %700 = vperm.xlu1 %1156, %v1165_v58  }
 0x26b   : > { %695 = vperm.xlu0 %1157, %v1167_v59  }
 0x2de   : > { %v589_v62 = vpop.xlane.xlu0 %588 }
 0x2df   : > { %v593_v1 = vadd.f32 %v589_v62, %v583_v61 }
 0x2e1   : > { %596 = vst.msk [vmem:[#allocation3] sm:$0xff] %vm422_vm2, %v593_v1 }
 0x2e2   : > { %v592_v3 = vpop.xlane.xlu1 %591 }
 0x2e3   : > { %v594_v4 = vadd.f32 %v592_v3, %v584_v2 }
 0x2e5   : > { %597 = vst.msk [vmem:[#allocation3 + $0x8] sm:$0xff] %vm422_vm2, %v594_v4 }
 0x2e6   : > { %v696_v12 = vpop.permute.xlu0 %695  ;;  %v701_v15 = vpop.permute.xlu1 %700 }
 0x2e7   : > { %v703_v13 = vmul.f32 %v696_v12, %v691_v11  ;;  %v704_v19 = vmul.f32 %v701_v15, %v692_v14 }
 0x2e8   : > { %v716_v5 = vld [vmem:[#allocation3] sm:$0xff] }
 0x2e9   : > { %1168 = vrcp.f32 %v716_v5 }
 0x2ec   : > { %v717_v6 = vld [vmem:[#allocation3 + $0x8] sm:$0xff] }
 0x2ed   : > { %1170 = vrcp.f32 %v717_v6 }
 0x2f6   : > { %v1169_v8 = vpop.eup %1168 }
 0x2f7   : > { %722 = vperm.xlu0 %1157, %v1169_v8  }
 0x2fa   : > { %v1171_v10 = vpop.eup %1170 }
 0x2fb   : > { %727 = vperm.xlu0 %1157, %v1171_v10  }
 0x312   : > { %v639_v16 = vpop.f32.mrf.mxu0 }
 0x313   : > { %v705_v17 = vadd.f32 %v703_v13, %v639_v16 }
 0x314   : > { %v1047_v18 = vpop.f32.mrf.mxu0 }
 0x315   : > { %707 = vst.msk [vmem:[#allocation4] sm:$0xff] %vm427_vm0, %v705_v17 }
 0x316   : > { %v642_v20 = vpop.f32.mrf.mxu0  ;;  %v685_v21 = vpop.f32.mrf.mxu1 }
 0x317   : > { %v706_v0 = vadd.f32 %v704_v19, %v685_v21 }
 0x318   : > { %v1048_v22 = vpop.f32.mrf.mxu0  ;;  %v1053_v23 = vpop.f32.mrf.mxu1 }
 0x319   : > { %708 = vst.msk [vmem:[#allocation4 + $0x8] sm:$0xff] %vm427_vm0, %v706_v0 }
 0x31a   : > { %v688_v24 = vpop.f32.mrf.mxu1 }
 0x31c   : > { %v1054_v25 = vpop.f32.mrf.mxu1  ;;  %v714_v27 = vld [vmem:[#allocation4] sm:$0xff] }
 0x320   : > { %v715_v28 = vld [vmem:[#allocation4 + $0x8] sm:$0xff] }
 0x372   : > { %v723_v26 = vpop.permute.xlu0 %722 }
 0x373   : > { %v730_v30 = vmul.f32 %v723_v26, %v714_v27 }
 0x376   : > { %v728_v29 = vpop.permute.xlu0 %727 }
 0x377   : > { %v731_v31 = vmul.f32 %v728_v29, %v715_v28 }
 0x379   : > { %v1018_v32 = vpack.c.bf16 %v731_v31, %v730_v30 }
 0x37b   : > { %1060 = vmatmul.mubr.msk.bf16.vlgmr.msra.gmra.mxu0 %vm427_vm0, %v1018_v32 }
 0x43b   : > { %v799_v34 = vpop.f32.mrf.mxu0 }
 0x43c   : > { %v800_v35 = vadd.f32 %v1005_v33, %v799_v34 }
 0x43d   : > { %v1061_v36 = vpop.f32.mrf.mxu0 }
 0x43e   : > { %806 = vst [vmem:[%s410_s10] sm:$0xff] %v800_v35 }
 0x43f   : > { %v802_v37 = vpop.f32.mrf.mxu0 }
 0x440   : > { %v803_v38 = vadd.f32 %v1005_v33, %v802_v37 }
 0x441   : > { %v1062_v39 = vpop.f32.mrf.mxu0 }
 0x442   : > { %807 = vst [vmem:[%s410_s10 + $0x8] sm:$0xff] %v803_v38 }
 0x443   : > { %1295 = shalt.err (!%p1292_p9)
}
 0x444   : > { %s1296_s8 = scalar_lea.hbm %s1673_s11, 256  ;;  %s1300_s18 = scalar_lea.hbm %s1727_s6, 512 }
 0x445   : > { %p1297_p10 = scmp.ne.s32.totalorder %s1673_s11, %s1296_s8  ;;  %p1301_p2 = scmp.lt.s32.totalorder %s1673_s11, %s1727_s6 }
 0x446   : > { %p1302_p11 = scmp.lt.s32.totalorder %s1300_s18, %s1296_s8 }
 0x447   : > { %p1298_p0 = pnand %p1297_p10, %p1518_p12 }
 0x448   : > { %p1303_p3 = por %p1302_p11, %p1301_p2 }
 0x449   : > { %p1299_p7 = pneg %p1298_p0 }
 0x44b   : > { %p1304_p1 = pnand %p1303_p3, %p1299_p7 }
 0x44d   : > { %1307 = shalt.err (!%p1304_p1)
}
 0x44e   : > { %s1385_s27 = smov 128   ;;  %s1386_s20 = smov 8  }
 0x44f   : > { %1073 = dma.vmem_to_hbm [thread:$0]  (%p1518_p12), %s1668_s16, 256, %s1673_s11, %s809_s28, %s1385_s27, %s1385_s27, %s1386_s20  }
 0x450 PF: > { %s1764_s26 = sld [smem:[#allocation19_spill]]  ;;  %s838_s10 = sand.u32 1, %s1350_s21  }
 0x451   : > { %s839_s29 = scalar_lea.sflag [#allocation7], %s838_s10 }
 0x456   : > { %p1765_p4 = scmp.ge.s32.totalorder %s1764_s26, 2 }
 0x458   : > { %p1090_p5 = pnand %p1765_p4, %p1522_p13 }
 0x45a   : > { %p1091_p8 = pneg %p1090_p5 }
 0x45c   : > { %1345 = dma.done.wait (%p1091_p8), %s839_s29, 256  }
 0x45d   : > { %1347 = vsyncadd (%p1091_p8), %s839_s29, 4294967040  ;;  %s26_s26 = sadd.s32 1, %s1764_s26   ;;  %s1766_s14 = sld [smem:[#allocation21_spill]] }
 0x45e   : > { %p23_p6 = scmp.ge.s32.totalorder %s26_s26, 4   ;;  %s1767_s24 = sld [smem:[#allocation18_spill]] }
 0x45f   : > { %s1768_s25 = sld [smem:[#allocation20_spill]]  ;;  %s1769_s21 = smov %s1354_s22 }
 0x460   : > { %s1770_s22 = smov %s1358_s23  ;;  %25 = sbr.rel (!%p23_p6) target bundleno = 12 (0xc), region = 128 }
 0x463   : > { %s1771_s23 = smov %s1766_s14 }
 0x465   :  { %844 = vsyncpa [#allocation6], 1 }
 0x466   :  { %846 = vsyncpa [#allocation6 + $0x1], 1 }
 0x467   :  { %847 = vsyncpa [#allocation9], 1 }
 0x468   :  { %849 = vsyncpa [#allocation9 + $0x1], 1 }
 0x469   :  { %850 = vsyncpa [#allocation12], 1 }
 0x46a   :  { %851 = vsyncpa [#allocation7], 1 }
 0x46b   :  { %853 = vsyncpa [#allocation7 + $0x1], 1 }

</bundles_post_ra>
